<compile_context>
chip_gen: v5e
topology: v5e:2x2
jax: 0.10.0
libtpu: 0.0.40
codegen_flags: <defaults>
</compile_context>

<pallas_src>
import functools

import jax
import jax.numpy as jnp
from jax.experimental import pallas as pl
from jax.experimental.pallas import tpu as pltpu


def _round_up(x: int, m: int) -> int:
    return ((x + m - 1) // m) * m


def _cdiv(a: int, b: int) -> int:
    return (a + b - 1) // b


def _sublane(dtype) -> int:
    # Sub-32-bit dtypes pack along sublanes: f32 -> 8, bf16 -> 16, int8 -> 32.
    return 8 * (4 // jnp.dtype(dtype).itemsize)


def _linear_kernel_resident(x_ref, w_ref, b_ref, o_ref):
    # x_ref: (tm, K)  w_ref: (K, tn)  b_ref: (1, tn)  o_ref: (tm, tn)
    # Whole-K contraction: the weight panel's block index depends only on the
    # outer grid axis, so it stays VMEM-resident across all inner (row-block)
    # steps -> W is fetched from HBM exactly once.
    o_ref[...] = (
        jnp.dot(x_ref[...], w_ref[...], preferred_element_type=jnp.float32)
        + b_ref[...].astype(jnp.float32)
    ).astype(o_ref.dtype)


def _linear_kernel_ktiled(x_ref, w_ref, b_ref, o_ref, acc_ref):
    # x_ref: (tm, tk)  w_ref: (tk, tn)  b_ref: (1, tn)
    # o_ref: (tm, tn)  acc_ref: (tm, tn) f32 scratch (output-resident over K)
    k = pl.program_id(2)

    @pl.when(k == 0)
    def _init():
        # Initialize the accumulator with the broadcast bias: bias is applied
        # exactly once and the epilogue is a bare cast+store.
        acc_ref[...] = jnp.broadcast_to(
            b_ref[...].astype(jnp.float32), acc_ref.shape
        )

    acc_ref[...] += jnp.dot(
        x_ref[...], w_ref[...], preferred_element_type=jnp.float32
    )

    @pl.when(k == pl.num_programs(2) - 1)
    def _finalize():
        o_ref[...] = acc_ref[...].astype(o_ref.dtype)


@functools.partial(
    jax.jit,
    static_argnames=("tm_max", "tn_max", "tk_max", "resident_vmem_cap"),
)
def linear_pallas(
    x,
    weight,
    bias=None,
    *,
    tm_max=512,
    tn_max=512,
    tk_max=512,
    resident_vmem_cap=20 << 20,
):
    """y = x @ weight.T + bias (PyTorch nn.Linear forward) via Pallas.

    x:      (..., in_features)
    weight: (out_features, in_features)   (PyTorch convention)
    bias:   (out_features,) or None
    """
    *lead, IN = x.shape
    OUT, IN_w = weight.shape
    assert IN == IN_w, "in_features mismatch"

    x2d = x.reshape(-1, IN)
    B = x2d.shape[0]
    out_dtype = x.dtype

    if bias is None:
        bias = jnp.zeros((OUT,), dtype=out_dtype)

    # TODO(synk): in a real model, store `weight` pre-transposed (and padded to
    # 128-multiples) as (IN, OUT) once at load time so this per-call
    # transpose/pad HBM traffic is not paid.
    w_t = weight.T  # (IN, OUT): contraction on IN, OUT lands on lanes.

    sub = _sublane(x.dtype)
    itemsize_x = jnp.dtype(x.dtype).itemsize
    itemsize_w = jnp.dtype(weight.dtype).itemsize
    itemsize_b = jnp.dtype(bias.dtype).itemsize
    itemsize_o = jnp.dtype(out_dtype).itemsize

    # ---- tile selection --------------------------------------------------
    # tm: minimize M padding (waste capped below one sublane row per block).
    n_m_blocks = _cdiv(B, tm_max)
    tm = _round_up(_cdiv(B, n_m_blocks), sub)
    M_pad = n_m_blocks * tm

    K_min = _round_up(IN, 128)
    N_min = _round_up(OUT, 128)

    tn = min(tn_max, N_min)
    # v7x has 2 TensorCores fed by the parallel grid axes: for skinny
    # (single M-block) problems split N into >=2 blocks so both cores work.
    # Neutral on v5e/v6e.
    if n_m_blocks == 1 and N_min >= 256:
        tn = min(tn, max(128, 128 * ((N_min // 128) // 2)))
    N_pad = _round_up(OUT, tn)

    # ---- path selection ----------------------------------------------------
    # Weight-resident whole-K path: gate on the double-buffered VMEM footprint
    # so it is safe on v5e (16 MiB scoped default raised below), v6e and v7x.
    resident_bytes = 2 * (
        tm * K_min * itemsize_x        # x tile
        + K_min * tn * itemsize_w      # weight panel
        + tm * tn * itemsize_o         # output tile
        + tn * itemsize_b              # bias tile
    )
    use_resident = resident_bytes <= resident_vmem_cap

    if use_resident:
        K_pad = K_min
        x_p = jnp.pad(x2d, ((0, M_pad - B), (0, K_pad - IN)))
        w_p = jnp.pad(w_t, ((0, K_pad - IN), (0, N_pad - OUT)))
        b_p = jnp.pad(bias.reshape(1, OUT), ((0, 0), (0, N_pad - OUT)))

        grid = (N_pad // tn, M_pad // tm)  # j outer, i inner (weight resident)

        cost = pl.CostEstimate(
            flops=2 * M_pad * K_pad * N_pad,
            transcendentals=0,
            bytes_accessed=(
                (N_pad // tn) * M_pad * K_pad * itemsize_x   # x re-streamed per j
                + K_pad * N_pad * itemsize_w                 # W fetched once
                + N_pad * itemsize_b
                + M_pad * N_pad * itemsize_o
            ),
        )

        y_p = pl.pallas_call(
            _linear_kernel_resident,
            out_shape=jax.ShapeDtypeStruct((M_pad, N_pad), out_dtype),
            grid=grid,
            in_specs=[
                pl.BlockSpec((tm, K_pad), lambda j, i: (i, 0)),   # x row block
                pl.BlockSpec((K_pad, tn), lambda j, i: (0, j)),   # W panel (resident)
                pl.BlockSpec((1, tn), lambda j, i: (0, j)),       # bias
            ],
            out_specs=pl.BlockSpec((tm, tn), lambda j, i: (i, j)),
            compiler_params=pltpu.CompilerParams(
                dimension_semantics=("parallel", "parallel"),
                # Footprint gated to <=20 MiB above; 28 MiB limit leaves
                # headroom and stays inside v7x's 64 MiB physical VMEM.
                vmem_limit_bytes=28 << 20,
            ),
            cost_estimate=cost,
        )(x_p, w_p, b_p)
    else:
        tk = min(tk_max, K_min)
        K_pad = _round_up(IN, tk)

        x_p = jnp.pad(x2d, ((0, M_pad - B), (0, K_pad - IN)))
        w_p = jnp.pad(w_t, ((0, K_pad - IN), (0, N_pad - OUT)))
        b_p = jnp.pad(bias.reshape(1, OUT), ((0, 0), (0, N_pad - OUT)))

        grid = (M_pad // tm, N_pad // tn, K_pad // tk)

        cost = pl.CostEstimate(
            flops=2 * M_pad * K_pad * N_pad,
            transcendentals=0,
            bytes_accessed=(
                (N_pad // tn) * M_pad * K_pad * itemsize_x      # x re-streamed per j
                + (M_pad // tm) * K_pad * N_pad * itemsize_w    # W re-streamed per i
                + (M_pad // tm) * N_pad * itemsize_b
                + M_pad * N_pad * itemsize_o
            ),
        )

        y_p = pl.pallas_call(
            _linear_kernel_ktiled,
            out_shape=jax.ShapeDtypeStruct((M_pad, N_pad), out_dtype),
            grid=grid,
            in_specs=[
                pl.BlockSpec((tm, tk), lambda i, j, k: (i, k)),   # x tile
                pl.BlockSpec((tk, tn), lambda i, j, k: (k, j)),   # W^T tile
                pl.BlockSpec((1, tn), lambda i, j, k: (0, j)),    # bias tile
            ],
            out_specs=pl.BlockSpec((tm, tn), lambda i, j, k: (i, j)),
            scratch_shapes=[pltpu.VMEM((tm, tn), jnp.float32)],
            compiler_params=pltpu.CompilerParams(
                dimension_semantics=("parallel", "parallel", "arbitrary"),
            ),
            cost_estimate=cost,
        )(x_p, w_p, b_p)

    y = y_p[:B, :OUT]
    return y.reshape(*lead, OUT)


if __name__ == "__main__":
    key = jax.random.PRNGKey(0)
    k_x, k_w, k_b = jax.random.split(key, 3)

    batch, in_features, out_features = 8, 32, 16

    x = jax.random.normal(k_x, (batch, in_features), dtype=jnp.float32)
    # Deterministic init mimicking nn.Linear's uniform(-1/sqrt(in), 1/sqrt(in))
    bound = 1.0 / (in_features ** 0.5)
    weight = jax.random.uniform(
        k_w, (out_features, in_features), dtype=jnp.float32,
        minval=-bound, maxval=bound)
    bias = jax.random.uniform(
        k_b, (out_features,), dtype=jnp.float32, minval=-bound, maxval=bound)

    y_ref = x @ weight.T + bias

    # Default (weight-resident whole-K) path.
    y = linear_pallas(x, weight, bias)
    jax.block_until_ready(y)
    assert y.shape == (batch, out_features)
    assert jnp.allclose(y, y_ref, atol=1e-5, rtol=1e-5)

    # K-tiled reduction path (forced, for coverage of the large-K fallback).
    y2 = linear_pallas(x, weight, bias, resident_vmem_cap=0)
    jax.block_until_ready(y2)
    assert jnp.allclose(y2, y_ref, atol=1e-5, rtol=1e-5)

    # bias=None support (nn.Linear allows it).
    y3 = linear_pallas(x, weight, None)
    jax.block_until_ready(y3)
    assert jnp.allclose(y3, x @ weight.T, atol=1e-5, rtol=1e-5)

    print("KERNEL_OK")
</pallas_src>

<mosaic_0001>
module attributes {stable_mosaic.version = 11 : i64} {
  func.func @_linear_kernel_resident(%arg0: i32, %arg1: i32, %arg2: memref<8x128xf32, #tpu.memory_space<vmem>>, %arg3: memref<128x128xf32, #tpu.memory_space<vmem>>, %arg4: memref<1x128xf32, #tpu.memory_space<vmem>>, %arg5: memref<8x128xf32, #tpu.memory_space<vmem>>) attributes {dimension_semantics = [#tpu.dimension_semantics<parallel>, #tpu.dimension_semantics<parallel>], iteration_bounds = array<i64: 1, 1>, scalar_prefetch = 0 : i64, scratch_operands = 0 : i64, tpu.core_type = #tpu.core_type<tc>, window_params = [{transform_indices = @transform_0, window_bounds = array<i64: 8, 128>}, {transform_indices = @transform_1, window_bounds = array<i64: 128, 128>}, {transform_indices = @transform_2, window_bounds = array<i64: 1, 128>}, {transform_indices = @transform_3, window_bounds = array<i64: 8, 128>}]} {
    %c0 = arith.constant 0 : index
    %c0_0 = arith.constant 0 : index
    %0 = vector.load %arg2[%c0, %c0_0] : memref<8x128xf32, #tpu.memory_space<vmem>>, vector<8x128xf32>
    %c0_1 = arith.constant 0 : index
    %c0_2 = arith.constant 0 : index
    %1 = vector.load %arg3[%c0_1, %c0_2] : memref<128x128xf32, #tpu.memory_space<vmem>>, vector<128x128xf32>
    %cst = arith.constant dense<0.000000e+00> : vector<8x128xf32>
    %2 = tpu.matmul %0, %1, %cst {dimension_numbers = #tpu.dot_dimension_numbers<[1], [0], [0], [1], [0, 0, 1, 1], [], []>} : vector<8x128xf32>, vector<128x128xf32>, vector<8x128xf32> -> vector<8x128xf32>
    %c0_3 = arith.constant 0 : index
    %c0_4 = arith.constant 0 : index
    %3 = vector.load %arg4[%c0_3, %c0_4] : memref<1x128xf32, #tpu.memory_space<vmem>>, vector<1x128xf32>
    %4 = vector.broadcast %3 : vector<1x128xf32> to vector<8x128xf32>
    %5 = arith.addf %2, %4 : vector<8x128xf32>
    %c0_5 = arith.constant 0 : index
    %c0_6 = arith.constant 0 : index
    %6 = vector.load %arg5[%c0_5, %c0_6] : memref<8x128xf32, #tpu.memory_space<vmem>>, vector<8x128xf32>
    tpu.vector_store %arg5[%c0_5, %c0_6], %5 {strides = array<i32>} : memref<8x128xf32, #tpu.memory_space<vmem>>, vector<8x128xf32>,
    return
  }
  func.func @transform_0(%arg0: i32, %arg1: i32) -> (i32, i32) {
    %c0_i32 = arith.constant 0 : i32
    %c0_i32_0 = arith.constant 0 : i32
    return %arg1, %c0_i32 : i32, i32
  }
  func.func @transform_1(%arg0: i32, %arg1: i32) -> (i32, i32) {
    %c0_i32 = arith.constant 0 : i32
    %c0_i32_0 = arith.constant 0 : i32
    return %c0_i32, %arg0 : i32, i32
  }
  func.func @transform_2(%arg0: i32, %arg1: i32) -> (i32, i32) {
    %c0_i32 = arith.constant 0 : i32
    %c0_i32_0 = arith.constant 0 : i32
    return %c0_i32, %arg0 : i32, i32
  }
  func.func @transform_3(%arg0: i32, %arg1: i32) -> (i32, i32) {
    %c0_i32 = arith.constant 0 : i32
    return %arg1, %arg0 : i32, i32
  }
}

</mosaic_0001>

<bundles_post_ra>
// kernel: linear_pallas.1
= control target key start
LH: loop header
LB: loop body
LE: loop exit
PB: predicated region body
PF: predicated region fallthrough
CT: control target
= control target key end

     0   :  { %s179_s0 = inlined_call_operand.vmem [shape: f32[8,128], index: 0, kind: input, shape index: {}]   ;;  %s180_s1 = inlined_call_operand.vmem [shape: f32[128,128], index: 1, kind: input, shape index: {}]   ;;  %s181_s2 = inlined_call_operand.vmem [shape: f32[1,128], index: 2, kind: input, shape index: {}]   ;;  %s182_s3 = inlined_call_operand.hbm [shape: f32[8,128], index: 3, kind: output, shape index: {}]  }
   0x1   :  { %v31_v0 = vld [vmem:[%s180_s1 + $0x78] sm:$0xff]  ;;  %v30_v1 = vld [vmem:[%s180_s1 + $0x70] sm:$0xff]  ;;  %v29_v2 = vld [vmem:[%s180_s1 + $0x68] sm:$0xff] }
   0x2   :  { %36 = vmatpush.msra.mxu0 %v31_v0  ;;  %v28_v3 = vld [vmem:[%s180_s1 + $0x60] sm:$0xff]  ;;  %v27_v4 = vld [vmem:[%s180_s1 + $0x58] sm:$0xff] }
   0x4   :  { %37 = vmatpush.msra.mxu0 %v30_v1 }
   0x6   :  { %38 = vmatpush.msra.mxu0 %v29_v2 }
   0x7   :  { %8 = vsyncpa [#allocation3], 0  ;;  %v26_v5 = vld [vmem:[%s180_s1 + $0x50] sm:$0xff]  ;;  %v25_v6 = vld [vmem:[%s180_s1 + $0x48] sm:$0xff]  ;;  %s101_s21 = smov [#allocation2]   ;;  %s64_s25 = sshll.u32 %s182_s3, 4  ;;  %s65_s25 = int_to_ptr.hbm [resolvable:$true] %s64_s25 }
   0x8   :  { %39 = vmatpush.msra.mxu0 %v28_v3  ;;  %v24_v7 = vld [vmem:[%s180_s1 + $0x40] sm:$0xff]  ;;  %v23_v8 = vld [vmem:[%s180_s1 + $0x38] sm:$0xff]  ;;  %v22_v9 = vld [vmem:[%s180_s1 + $0x30] sm:$0xff]  ;;  %s62_s22 = sshll.u32 %s101_s21, 4  ;;  %s63_s22 = int_to_ptr.vmem [resolvable:$true] %s62_s22 }
   0x9   :  { %v21_v10 = vld [vmem:[%s180_s1 + $0x28] sm:$0xff]  ;;  %v20_v11 = vld [vmem:[%s180_s1 + $0x20] sm:$0xff]  ;;  %v19_v12 = vld [vmem:[%s180_s1 + $0x18] sm:$0xff] }
   0xa   :  { %40 = vmatpush.msra.mxu0 %v27_v4  ;;  %v18_v13 = vld [vmem:[%s180_s1 + $0x10] sm:$0xff]  ;;  %v17_v14 = vld [vmem:[%s180_s1 + $0x8] sm:$0xff]  ;;  %v16_v15 = vld [vmem:[%s180_s1] sm:$0xff] }
   0xb   :  { %v15_v16 = vld [vmem:[%s179_s0] sm:$0xff] }
   0xc   :  { %41 = vmatpush.msra.mxu0 %v26_v5  ;;  %v74_v17 = vld [vmem:[%s181_s2] ss:$0 sm:$0xff] }
   0xe   :  { %42 = vmatpush.msra.mxu0 %v25_v6 }
  0x10   :  { %43 = vmatpush.msra.mxu0 %v24_v7 }
  0x12   :  { %44 = vmatpush.msra.mxu0 %v23_v8 }
  0x14   :  { %45 = vmatpush.msra.mxu0 %v22_v9 }
  0x16   :  { %46 = vmatpush.msra.mxu0 %v21_v10 }
  0x18   :  { %47 = vmatpush.msra.mxu0 %v20_v11 }
  0x1a   :  { %48 = vmatpush.msra.mxu0 %v19_v12 }
  0x1c   :  { %49 = vmatpush.msra.mxu0 %v18_v13 }
  0x1e   :  { %50 = vmatpush.msra.mxu0 %v17_v14 }
  0x20   :  { %51 = vmatpush.msra.mxu0 %v16_v15 }
  0x21   :  { %52 = vmatmul.f32.vlgmr.msra.gmra.mxu0 %v15_v16 }
  0x9e   :  { %v53_v18 = vpop.f32.mrf.mxu0 }
  0x9f   :  { %v54_v19 = vadd.f32 %v74_v17, %v53_v18 }
  0xa1   :  { %56 = vst [vmem:[#allocation2] sm:$0xff] %v54_v19 }
  0xa2   :  { %67 = dma.vmem_to_hbm [thread:$0]  %s63_s22, 128, %s65_s25, [#allocation3]  }
  0xa3   :  { %99 = dma.done.wait [#allocation3], 128  }
  0xa4   :  { %100 = vsyncadd [#allocation3], 4294967168 }
  0xa5   :  { %72 = vsyncpa [#allocation3], 1 }

</bundles_post_ra>
